<compile_context>
chip_gen: v7x
topology: tpu7x:2x2x1
jax: 0.10.0
libtpu: 0.0.40
codegen_flags: <defaults>
</compile_context>

<pallas_src>
import functools

import jax
import jax.numpy as jnp
from jax import lax
from jax.experimental import pallas as pl
from jax.experimental.pallas import tpu as pltpu

LEAKY_SLOPE = 0.01  # PyTorch nn.LeakyReLU default negative_slope


def _leaky_relu(v):
    # max-form: identical to where(v>0, v, a*v) for 0 <= a <= 1; one VPU op cheaper.
    return jnp.maximum(v, LEAKY_SLOPE * v)


def _round_up(n, m):
    return ((n + m - 1) // m) * m


def _sublane(dtype):
    # second-minor tiling multiple: 8 for 4-byte, 16 for 2-byte, 32 for 1-byte dtypes
    return 8 * (4 // jnp.dtype(dtype).itemsize)


def _default_tb():
    # v5e's MXU is 128-wide and has no bf16 VALU; bigger tiles only add spill pressure.
    try:
        kind = jax.devices()[0].device_kind.lower()
    except Exception:
        return 256
    return 128 if ("v5 lite" in kind or "v5e" in kind) else 256


# ----------------------------------------------------------------------------------
# Kernels
# ----------------------------------------------------------------------------------
def _mlp_kernel_resident(x_ref, w1_ref, b1_ref, wh_ref, bh_ref, wl_ref, bl_ref,
                         o_ref, *, num_hid_layers, mxu_dtype, act_dtype):
    """All weights VMEM-resident (constant block index, single-buffered)."""
    x = x_ref[...].astype(mxu_dtype)                    # in-kernel cast (no wrapper pass)
    h = (jnp.dot(x, w1_ref[...], preferred_element_type=jnp.float32)
         + b1_ref[...]).astype(act_dtype)
    x0 = h                                              # residual branch (x.clone())

    def layer(l, h):
        a = _leaky_relu(h).astype(mxu_dtype)
        acc = jnp.dot(a, wh_ref[l], preferred_element_type=jnp.float32)
        return (acc + bh_ref[l]).astype(act_dtype)      # (1, Nh_p) sublane broadcast

    if num_hid_layers <= 4:
        for l in range(num_hid_layers):
            h = layer(l, h)
    elif num_hid_layers > 0:
        h = lax.fori_loop(0, num_hid_layers, layer, h, unroll=2)

    h = _leaky_relu(x0 + h).astype(mxu_dtype)
    out = jnp.dot(h, wl_ref[...], preferred_element_type=jnp.float32) + bl_ref[...]
    o_ref[...] = out.astype(o_ref.dtype)                # lane-dense (No_p % 128 == 0)


def _mlp_kernel_streamed(x_ref, w1_ref, b1_ref, wh_hbm, bh_ref, wl_ref, bl_ref,
                         o_ref, wbuf, sem, *, num_hid_layers, mxu_dtype, act_dtype):
    """wh stays in HBM; layer weights are manually double-buffered into VMEM scratch,
    prefetching layer l+1 while layer l's matmul runs (v7x 64 MiB/TC config)."""

    def fetch(l, slot):
        pltpu.make_async_copy(wh_hbm.at[l], wbuf.at[slot], sem.at[slot]).start()

    fetch(0, 0)  # hide layer-0 weight DMA behind fc_first's matmul

    x = x_ref[...].astype(mxu_dtype)
    h = (jnp.dot(x, w1_ref[...], preferred_element_type=jnp.float32)
         + b1_ref[...]).astype(act_dtype)
    x0 = h

    def layer(l, h):
        slot = l % 2
        pltpu.make_async_copy(wh_hbm.at[l], wbuf.at[slot], sem.at[slot]).wait()

        @pl.when(l + 1 < num_hid_layers)
        def _():
            fetch(l + 1, 1 - slot)

        a = _leaky_relu(h).astype(mxu_dtype)
        acc = jnp.dot(a, wbuf[slot], preferred_element_type=jnp.float32)
        return (acc + bh_ref[l]).astype(act_dtype)

    h = lax.fori_loop(0, num_hid_layers, layer, h)

    h = _leaky_relu(x0 + h).astype(mxu_dtype)
    out = jnp.dot(h, wl_ref[...], preferred_element_type=jnp.float32) + bl_ref[...]
    o_ref[...] = out.astype(o_ref.dtype)


# ----------------------------------------------------------------------------------
# Host-side wrappers
# ----------------------------------------------------------------------------------
def prepare_params(params, *, num_hid_layers, mxu_dtype=jnp.bfloat16):
    """Pad (exact zero-padding) + cast the weights ONCE, outside the per-call path.

    Weights are stored as (in_features, out_features). Feature dims are lane-padded
    so every matmul / store is lane-dense; Ni is only padded to the sublane multiple.
    """
    Ni, Nh = params["w1"].shape
    No = params["wl"].shape[1]
    L = num_hid_layers
    Ls = max(L, 1)

    Ni_p = _round_up(Ni, _sublane(mxu_dtype))
    Nh_p = _round_up(Nh, 128)
    No_p = _round_up(No, 128)   # lane-dense, unmasked output store
    f32 = jnp.float32

    if L == 0:
        wh_src = jnp.zeros((1, Nh, Nh), params["w1"].dtype)
        bh_src = jnp.zeros((1, Nh), params["w1"].dtype)
    else:
        wh_src = params["wh"]
        bh_src = params["bh"]

    return {
        "w1": jnp.pad(params["w1"], ((0, Ni_p - Ni), (0, Nh_p - Nh))).astype(mxu_dtype),
        "b1": jnp.pad(params["b1"].reshape(1, Nh), ((0, 0), (0, Nh_p - Nh))).astype(f32),
        "wh": jnp.pad(wh_src, ((0, 0), (0, Nh_p - Nh), (0, Nh_p - Nh))).astype(mxu_dtype),
        "bh": jnp.pad(bh_src.reshape(Ls, 1, Nh),
                      ((0, 0), (0, 0), (0, Nh_p - Nh))).astype(f32),
        "wl": jnp.pad(params["wl"], ((0, Nh_p - Nh), (0, No_p - No))).astype(mxu_dtype),
        "bl": jnp.pad(params["bl"].reshape(1, No), ((0, 0), (0, No_p - No))).astype(f32),
    }


@functools.partial(
    jax.jit,
    static_argnames=("num_hid_layers", "n_out", "tb", "act_dtype", "stream_wh",
                     "single_buffer_weights"))
def _mlp_forward(x, prep, *, num_hid_layers, n_out, tb, act_dtype, stream_wh,
                 single_buffer_weights):
    B, Ni = x.shape
    Ni_p, Nh_p = prep["w1"].shape
    No_p = prep["wl"].shape[1]
    Ls = prep["wh"].shape[0]
    L = num_hid_layers
    mxu_dtype = prep["w1"].dtype          # MXU operand dtype comes from the prepared weights
    out_dtype = x.dtype

    # --- batch tiling: big tiles, but >= 2 tiles so both v7x TensorCores get work ---
    tb = max(8, min(tb, _round_up(B, 8)))
    if B > 8 and _round_up(B, tb) // tb < 2:
        tb = max(8, _round_up((B + 1) // 2, 8))
    B_p = _round_up(B, tb)
    grid = (B_p // tb,)

    # --- minimal input padding: no 128-lane inflation of Ni, no wrapper-side cast ---
    if (B_p, Ni_p) != (B, Ni):
        x = jnp.pad(x, ((0, B_p - B), (0, Ni_p - Ni)))

    # --- generation-aware VMEM budget --------------------------------------------
    try:
        vmem_cap = int(pltpu.get_tpu_info().vmem_capacity_bytes)
    except Exception:
        vmem_cap = 64 * 1024 * 1024       # conservative: v7x has 64 MiB per TensorCore
    wsize = jnp.dtype(mxu_dtype).itemsize
    wfac = 1 if single_buffer_weights else 2
    fixed_bytes = wfac * ((Ni_p * Nh_p + Nh_p * No_p) * wsize            # w1, wl
                          + ((Ls + 1) * Nh_p + No_p) * 4)                # f32 biases
    io_bytes = 2 * tb * (Ni_p * jnp.dtype(x.dtype).itemsize
                         + No_p * jnp.dtype(out_dtype).itemsize)         # x/o double-buffered
    act_bytes = 4 * tb * Nh_p * 4                                        # h, x0, f32 temps
    wh_resident = wfac * Ls * Nh_p * Nh_p * wsize
    base = fixed_bytes + io_bytes + act_bytes + (2 << 20)                # compiler slack
    budget = int(0.80 * vmem_cap)
    if stream_wh is None:
        stream_wh = (L > 0) and (base + wh_resident > budget)
    stream_wh = bool(stream_wh) and (L > 0)
    wh_vmem = (2 * Nh_p * Nh_p * wsize) if stream_wh else wh_resident
    needed = base + wh_vmem
    if needed > budget:
        raise ValueError(f"tile does not fit VMEM budget ({needed} > {budget} bytes); "
                         "lower tb or Nh")
    vmem_limit = int(min(max(2 * needed, 32 << 20), int(0.9 * vmem_cap)))

    # --- BlockSpecs ----------------------------------------------------------------
    def const_spec(shape, imap):
        if single_buffer_weights:
            return pl.BlockSpec(shape, imap, pipeline_mode=pl.Buffered(1))
        return pl.BlockSpec(shape, imap)

    in_specs = [
        pl.BlockSpec((tb, Ni_p), lambda i: (i, 0)),                    # x (only streamed op)
        const_spec((Ni_p, Nh_p), lambda i: (0, 0)),                    # w1 (resident)
        const_spec((1, Nh_p), lambda i: (0, 0)),                       # b1
        None,                                                          # wh (filled below)
        const_spec((Ls, 1, Nh_p), lambda i: (0, 0, 0)),                # bh stack
        const_spec((Nh_p, No_p), lambda i: (0, 0)),                    # wl
        const_spec((1, No_p), lambda i: (0, 0)),                       # bl
    ]
    if stream_wh:
        in_specs[3] = pl.BlockSpec(memory_space=pl.ANY)                # wh stays in HBM
        scratch_shapes = [pltpu.VMEM((2, Nh_p, Nh_p), mxu_dtype),
                          pltpu.SemaphoreType.DMA((2,))]
        kernel = functools.partial(_mlp_kernel_streamed, num_hid_layers=L,
                                   mxu_dtype=mxu_dtype, act_dtype=act_dtype)
    else:
        in_specs[3] = const_spec((Ls, Nh_p, Nh_p), lambda i: (0, 0, 0))  # wh resident
        scratch_shapes = []
        kernel = functools.partial(_mlp_kernel_resident, num_hid_layers=L,
                                   mxu_dtype=mxu_dtype, act_dtype=act_dtype)

    out_p = pl.pallas_call(
        kernel,
        out_shape=jax.ShapeDtypeStruct((B_p, No_p), out_dtype),
        grid_spec=pltpu.PrefetchScalarGridSpec(
            num_scalar_prefetch=0,
            grid=grid,
            in_specs=in_specs,
            out_specs=pl.BlockSpec((tb, No_p), lambda i: (i, 0)),      # lane-dense store
            scratch_shapes=scratch_shapes),
        compiler_params=pltpu.CompilerParams(
            dimension_semantics=("parallel",),                         # batch tiles across TCs
            vmem_limit_bytes=vmem_limit),
    )(x, prep["w1"], prep["b1"], prep["wh"], prep["bh"], prep["wl"], prep["bl"])

    return out_p[:B, :n_out]


def mlp_transform(x, prep, *, num_hid_layers, n_out, tb=None,
                  act_dtype=jnp.float32, stream_wh=None):
    """x: (B, Ni). prep: output of prepare_params (padded, MXU-dtype weights).

    act_dtype: dtype of inter-layer elementwise math. f32 is safe on all generations
    (v5e has no bf16 VALU); pass bf16 on v6e/v7x to halve VALU-slot pressure.
    stream_wh: None = auto (stream the hidden-weight stack from HBM only if it would
    not fit the VMEM budget resident); True/False to force.
    """
    if tb is None:
        tb = _default_tb()
    kw = dict(num_hid_layers=num_hid_layers, n_out=n_out, tb=tb,
              act_dtype=act_dtype, stream_wh=stream_wh)
    try:
        return _mlp_forward(x, prep, single_buffer_weights=True, **kw)
    except Exception:
        # Compatibility fallback: jax builds without BlockSpec pipeline_mode support.
        # Default double-buffered weights cost VMEM only, never correctness.
        return _mlp_forward(x, prep, single_buffer_weights=False, **kw)


# ----------------------------------------------------------------------------------
# Reference + init (PyTorch-equivalent)
# ----------------------------------------------------------------------------------
def init_params(key, Ni, No, Nh, num_hid_layers):
    """PyTorch-Linear-style init: U(-1/sqrt(fan_in), 1/sqrt(fan_in)); (in, out) layout."""
    ks = jax.random.split(key, 6)
    L = max(num_hid_layers, 1)

    def uni(k, shape, fan_in):
        bound = 1.0 / jnp.sqrt(fan_in)
        return jax.random.uniform(k, shape, jnp.float32, -bound, bound)

    return {
        "w1": uni(ks[0], (Ni, Nh), Ni),
        "b1": uni(ks[1], (Nh,), Ni),
        "wh": uni(ks[2], (L, Nh, Nh), Nh),
        "bh": uni(ks[3], (L, Nh), Nh),
        "wl": uni(ks[4], (Nh, No), Nh),
        "bl": uni(ks[5], (No,), Nh),
    }


def mlp_transform_ref(x, params, *, num_hid_layers):
    """Pure-JAX reference of the PyTorch forward."""
    h = x @ params["w1"] + params["b1"]
    x0 = h
    for l in range(num_hid_layers):
        h = _leaky_relu(h)
        h = h @ params["wh"][l] + params["bh"][l]
    h = _leaky_relu(x0 + h)
    return h @ params["wl"] + params["bl"]


if __name__ == "__main__":
    # Small shapes consistent with the module: batch=16, Ni=8, Nh=32, No=4, 2 hidden layers
    B, Ni, Nh, No, L = 16, 8, 32, 4, 2

    key = jax.random.PRNGKey(0)
    kx, kp = jax.random.split(key)
    x = jax.random.normal(kx, (B, Ni), dtype=jnp.float32)
    params = init_params(kp, Ni, No, Nh, L)

    ref = mlp_transform_ref(x, params, num_hid_layers=L)

    # 1) f32 MXU + f32 VPU, weights VMEM-resident: tight match vs reference.
    prep32 = prepare_params(params, num_hid_layers=L, mxu_dtype=jnp.float32)
    out = jax.block_until_ready(
        mlp_transform(x, prep32, num_hid_layers=L, n_out=No, act_dtype=jnp.float32))
    assert out.shape == (B, No)
    assert jnp.allclose(out, ref, atol=1e-5, rtol=1e-5), "f32 resident mismatch"

    # 2) Same math, but wh streamed layer-by-layer from HBM with manual double-buffer
    #    DMA (the large-L/Nh v7x configuration), forced here to exercise that path.
    out_s = jax.block_until_ready(
        mlp_transform(x, prep32, num_hid_layers=L, n_out=No, act_dtype=jnp.float32,
                      stream_wh=True))
    assert jnp.allclose(out_s, ref, atol=1e-5, rtol=1e-5), "f32 streamed mismatch"

    # 3) Recommended v6e/v7x fast path: bf16 MXU operands + bf16 elementwise,
    #    f32 accumulation everywhere -> loose tolerance.
    prep16 = prepare_params(params, num_hid_layers=L, mxu_dtype=jnp.bfloat16)
    out_bf = jax.block_until_ready(
        mlp_transform(x, prep16, num_hid_layers=L, n_out=No, act_dtype=jnp.bfloat16))
    assert out_bf.shape == (B, No)
    assert jnp.allclose(out_bf, ref, atol=5e-2, rtol=5e-2), "bf16 mismatch vs reference"

    print("KERNEL_OK")
</pallas_src>

<mosaic_0001>
module attributes {stable_mosaic.version = 11 : i64} {
  func.func @_mlp_kernel_resident(%arg0: i32, %arg1: memref<8x8xf32, #tpu.memory_space<vmem>>, %arg2: memref<8x128xf32, #tpu.memory_space<vmem>>, %arg3: memref<1x128xf32, #tpu.memory_space<vmem>>, %arg4: memref<2x128x128xf32, #tpu.memory_space<vmem>>, %arg5: memref<2x1x128xf32, #tpu.memory_space<vmem>>, %arg6: memref<128x128xf32, #tpu.memory_space<vmem>>, %arg7: memref<1x128xf32, #tpu.memory_space<vmem>>, %arg8: memref<8x128xf32, #tpu.memory_space<vmem>>) attributes {dimension_semantics = [#tpu.dimension_semantics<parallel>], iteration_bounds = array<i64: 2>, scalar_prefetch = 0 : i64, scratch_operands = 0 : i64, tpu.core_type = #tpu.core_type<tc>, window_params = [{transform_indices = @transform_0, window_bounds = array<i64: 8, 8>}, {pipeline_mode = #tpu.pipeline_mode<synchronous>, transform_indices = @transform_1, window_bounds = array<i64: 8, 128>}, {pipeline_mode = #tpu.pipeline_mode<synchronous>, transform_indices = @transform_2, window_bounds = array<i64: 1, 128>}, {pipeline_mode = #tpu.pipeline_mode<synchronous>, transform_indices = @transform_3, window_bounds = array<i64: 2, 128, 128>}, {pipeline_mode = #tpu.pipeline_mode<synchronous>, transform_indices = @transform_4, window_bounds = array<i64: 2, 1, 128>}, {pipeline_mode = #tpu.pipeline_mode<synchronous>, transform_indices = @transform_5, window_bounds = array<i64: 128, 128>}, {pipeline_mode = #tpu.pipeline_mode<synchronous>, transform_indices = @transform_6, window_bounds = array<i64: 1, 128>}, {transform_indices = @transform_7, window_bounds = array<i64: 8, 128>}]} {
    %c0 = arith.constant 0 : index
    %c0_0 = arith.constant 0 : index
    %0 = vector.load %arg1[%c0, %c0_0] : memref<8x8xf32, #tpu.memory_space<vmem>>, vector<8x8xf32>
    %c0_1 = arith.constant 0 : index
    %c0_2 = arith.constant 0 : index
    %1 = vector.load %arg2[%c0_1, %c0_2] : memref<8x128xf32, #tpu.memory_space<vmem>>, vector<8x128xf32>
    %cst = arith.constant dense<0.000000e+00> : vector<8x128xf32>
    %2 = tpu.matmul %0, %1, %cst {dimension_numbers = #tpu.dot_dimension_numbers<[1], [0], [0], [1], [0, 0, 1, 1], [], []>} : vector<8x8xf32>, vector<8x128xf32>, vector<8x128xf32> -> vector<8x128xf32>
    %c0_3 = arith.constant 0 : index
    %c0_4 = arith.constant 0 : index
    %3 = vector.load %arg3[%c0_3, %c0_4] : memref<1x128xf32, #tpu.memory_space<vmem>>, vector<1x128xf32>
    %4 = vector.broadcast %3 : vector<1x128xf32> to vector<8x128xf32>
    %5 = arith.addf %2, %4 : vector<8x128xf32>
    %cst_5 = arith.constant 0.00999999977 : f32
    %6 = vector.broadcast %cst_5 : f32 to vector<8x128xf32>
    %7 = arith.mulf %6, %5 : vector<8x128xf32>
    %8 = arith.maximumf %5, %7 : vector<8x128xf32>
    %c0_6 = arith.constant 0 : index
    %c0_7 = arith.constant 0 : index
    %c0_8 = arith.constant 0 : index
    %9 = vector.load %arg4[%c0_6, %c0_7, %c0_8] : memref<2x128x128xf32, #tpu.memory_space<vmem>>, vector<1x128x128xf32>
    %10 = vector.shape_cast %9 : vector<1x128x128xf32> to vector<128x128xf32>
    %cst_9 = arith.constant dense<0.000000e+00> : vector<8x128xf32>
    %11 = tpu.matmul %8, %10, %cst_9 {dimension_numbers = #tpu.dot_dimension_numbers<[1], [0], [0], [1], [0, 0, 1, 1], [], []>} : vector<8x128xf32>, vector<128x128xf32>, vector<8x128xf32> -> vector<8x128xf32>
    %c0_10 = arith.constant 0 : index
    %c0_11 = arith.constant 0 : index
    %c0_12 = arith.constant 0 : index
    %12 = vector.load %arg5[%c0_10, %c0_11, %c0_12] : memref<2x1x128xf32, #tpu.memory_space<vmem>>, vector<1x1x128xf32>
    %13 = vector.shape_cast %12 : vector<1x1x128xf32> to vector<1x128xf32>
    %14 = vector.broadcast %13 : vector<1x128xf32> to vector<8x128xf32>
    %15 = arith.addf %11, %14 : vector<8x128xf32>
    %cst_13 = arith.constant 0.00999999977 : f32
    %16 = vector.broadcast %cst_13 : f32 to vector<8x128xf32>
    %17 = arith.mulf %16, %15 : vector<8x128xf32>
    %18 = arith.maximumf %15, %17 : vector<8x128xf32>
    %c1 = arith.constant 1 : index
    %c0_14 = arith.constant 0 : index
    %c0_15 = arith.constant 0 : index
    %19 = vector.load %arg4[%c1, %c0_14, %c0_15] : memref<2x128x128xf32, #tpu.memory_space<vmem>>, vector<1x128x128xf32>
    %20 = vector.shape_cast %19 : vector<1x128x128xf32> to vector<128x128xf32>
    %cst_16 = arith.constant dense<0.000000e+00> : vector<8x128xf32>
    %21 = tpu.matmul %18, %20, %cst_16 {dimension_numbers = #tpu.dot_dimension_numbers<[1], [0], [0], [1], [0, 0, 1, 1], [], []>} : vector<8x128xf32>, vector<128x128xf32>, vector<8x128xf32> -> vector<8x128xf32>
    %c1_17 = arith.constant 1 : index
    %c0_18 = arith.constant 0 : index
    %c0_19 = arith.constant 0 : index
    %22 = vector.load %arg5[%c1_17, %c0_18, %c0_19] : memref<2x1x128xf32, #tpu.memory_space<vmem>>, vector<1x1x128xf32>
    %23 = vector.shape_cast %22 : vector<1x1x128xf32> to vector<1x128xf32>
    %24 = vector.broadcast %23 : vector<1x128xf32> to vector<8x128xf32>
    %25 = arith.addf %21, %24 : vector<8x128xf32>
    %26 = arith.addf %5, %25 : vector<8x128xf32>
    %cst_20 = arith.constant 0.00999999977 : f32
    %27 = vector.broadcast %cst_20 : f32 to vector<8x128xf32>
    %28 = arith.mulf %27, %26 : vector<8x128xf32>
    %29 = arith.maximumf %26, %28 : vector<8x128xf32>
    %c0_21 = arith.constant 0 : index
    %c0_22 = arith.constant 0 : index
    %30 = vector.load %arg6[%c0_21, %c0_22] : memref<128x128xf32, #tpu.memory_space<vmem>>, vector<128x128xf32>
    %cst_23 = arith.constant dense<0.000000e+00> : vector<8x128xf32>
    %31 = tpu.matmul %29, %30, %cst_23 {dimension_numbers = #tpu.dot_dimension_numbers<[1], [0], [0], [1], [0, 0, 1, 1], [], []>} : vector<8x128xf32>, vector<128x128xf32>, vector<8x128xf32> -> vector<8x128xf32>
    %c0_24 = arith.constant 0 : index
    %c0_25 = arith.constant 0 : index
    %32 = vector.load %arg7[%c0_24, %c0_25] : memref<1x128xf32, #tpu.memory_space<vmem>>, vector<1x128xf32>
    %33 = vector.broadcast %32 : vector<1x128xf32> to vector<8x128xf32>
    %34 = arith.addf %31, %33 : vector<8x128xf32>
    %c0_26 = arith.constant 0 : index
    %c0_27 = arith.constant 0 : index
    %35 = vector.load %arg8[%c0_26, %c0_27] : memref<8x128xf32, #tpu.memory_space<vmem>>, vector<8x128xf32>
    tpu.vector_store %arg8[%c0_26, %c0_27], %34 {strides = array<i32>} : memref<8x128xf32, #tpu.memory_space<vmem>>, vector<8x128xf32>,
    return
  }
  func.func @transform_0(%arg0: i32) -> (i32, i32) {
    %c0_i32 = arith.constant 0 : i32
    %c0_i32_0 = arith.constant 0 : i32
    return %arg0, %c0_i32 : i32, i32
  }
  func.func @transform_1(%arg0: i32) -> (i32, i32) {
    %c0_i32 = arith.constant 0 : i32
    %c0_i32_0 = arith.constant 0 : i32
    %c0_i32_1 = arith.constant 0 : i32
    return %c0_i32, %c0_i32_0 : i32, i32
  }
  func.func @transform_2(%arg0: i32) -> (i32, i32) {
    %c0_i32 = arith.constant 0 : i32
    %c0_i32_0 = arith.constant 0 : i32
    %c0_i32_1 = arith.constant 0 : i32
    return %c0_i32, %c0_i32_0 : i32, i32
  }
  func.func @transform_3(%arg0: i32) -> (i32, i32, i32) {
    %c0_i32 = arith.constant 0 : i32
    %c0_i32_0 = arith.constant 0 : i32
    %c0_i32_1 = arith.constant 0 : i32
    %c0_i32_2 = arith.constant 0 : i32
    return %c0_i32, %c0_i32_0, %c0_i32_1 : i32, i32, i32
  }
  func.func @transform_4(%arg0: i32) -> (i32, i32, i32) {
    %c0_i32 = arith.constant 0 : i32
    %c0_i32_0 = arith.constant 0 : i32
    %c0_i32_1 = arith.constant 0 : i32
    %c0_i32_2 = arith.constant 0 : i32
    return %c0_i32, %c0_i32_0, %c0_i32_1 : i32, i32, i32
  }
  func.func @transform_5(%arg0: i32) -> (i32, i32) {
    %c0_i32 = arith.constant 0 : i32
    %c0_i32_0 = arith.constant 0 : i32
    %c0_i32_1 = arith.constant 0 : i32
    return %c0_i32, %c0_i32_0 : i32, i32
  }
  func.func @transform_6(%arg0: i32) -> (i32, i32) {
    %c0_i32 = arith.constant 0 : i32
    %c0_i32_0 = arith.constant 0 : i32
    %c0_i32_1 = arith.constant 0 : i32
    return %c0_i32, %c0_i32_0 : i32, i32
  }
  func.func @transform_7(%arg0: i32) -> (i32, i32) {
    %c0_i32 = arith.constant 0 : i32
    %c0_i32_0 = arith.constant 0 : i32
    return %arg0, %c0_i32 : i32, i32
  }
}

module attributes {stable_mosaic.version = 11 : i64} {
  func.func @_mlp_kernel_resident(%arg0: i32, %arg1: memref<8x8xf32, #tpu.memory_space<vmem>>, %arg2: memref<8x128xf32, #tpu.memory_space<vmem>>, %arg3: memref<1x128xf32, #tpu.memory_space<vmem>>, %arg4: memref<2x128x128xf32, #tpu.memory_space<vmem>>, %arg5: memref<2x1x128xf32, #tpu.memory_space<vmem>>, %arg6: memref<128x128xf32, #tpu.memory_space<vmem>>, %arg7: memref<1x128xf32, #tpu.memory_space<vmem>>, %arg8: memref<8x128xf32, #tpu.memory_space<vmem>>) attributes {dimension_semantics = [#tpu.dimension_semantics<parallel>], iteration_bounds = array<i64: 2>, scalar_prefetch = 0 : i64, scratch_operands = 0 : i64, tpu.core_type = #tpu.core_type<tc>, window_params = [{transform_indices = @transform_0, window_bounds = array<i64: 8, 8>}, {pipeline_mode = #tpu.pipeline_mode<synchronous>, transform_indices = @transform_1, window_bounds = array<i64: 8, 128>}, {pipeline_mode = #tpu.pipeline_mode<synchronous>, transform_indices = @transform_2, window_bounds = array<i64: 1, 128>}, {pipeline_mode = #tpu.pipeline_mode<synchronous>, transform_indices = @transform_3, window_bounds = array<i64: 2, 128, 128>}, {pipeline_mode = #tpu.pipeline_mode<synchronous>, transform_indices = @transform_4, window_bounds = array<i64: 2, 1, 128>}, {pipeline_mode = #tpu.pipeline_mode<synchronous>, transform_indices = @transform_5, window_bounds = array<i64: 128, 128>}, {pipeline_mode = #tpu.pipeline_mode<synchronous>, transform_indices = @transform_6, window_bounds = array<i64: 1, 128>}, {transform_indices = @transform_7, window_bounds = array<i64: 8, 128>}]} {
    %c0 = arith.constant 0 : index
    %c0_0 = arith.constant 0 : index
    %0 = vector.load %arg1[%c0, %c0_0] : memref<8x8xf32, #tpu.memory_space<vmem>>, vector<8x8xf32>
    %c0_1 = arith.constant 0 : index
    %c0_2 = arith.constant 0 : index
    %1 = vector.load %arg2[%c0_1, %c0_2] : memref<8x128xf32, #tpu.memory_space<vmem>>, vector<8x128xf32>
    %cst = arith.constant dense<0.000000e+00> : vector<8x128xf32>
    %2 = tpu.matmul %0, %1, %cst {dimension_numbers = #tpu.dot_dimension_numbers<[1], [0], [0], [1], [0, 0, 1, 1], [], []>} : vector<8x8xf32>, vector<8x128xf32>, vector<8x128xf32> -> vector<8x128xf32>
    %c0_3 = arith.constant 0 : index
    %c0_4 = arith.constant 0 : index
    %3 = vector.load %arg3[%c0_3, %c0_4] : memref<1x128xf32, #tpu.memory_space<vmem>>, vector<1x128xf32>
    %4 = vector.broadcast %3 : vector<1x128xf32> to vector<8x128xf32>
    %5 = arith.addf %2, %4 : vector<8x128xf32>
    %cst_5 = arith.constant 0.00999999977 : f32
    %6 = vector.broadcast %cst_5 : f32 to vector<8x128xf32>
    %7 = arith.mulf %6, %5 : vector<8x128xf32>
    %8 = arith.maximumf %5, %7 : vector<8x128xf32>
    %c0_6 = arith.constant 0 : index
    %c0_7 = arith.constant 0 : index
    %c0_8 = arith.constant 0 : index
    %9 = vector.load %arg4[%c0_6, %c0_7, %c0_8] : memref<2x128x128xf32, #tpu.memory_space<vmem>>, vector<1x128x128xf32>
    %10 = vector.shape_cast %9 : vector<1x128x128xf32> to vector<128x128xf32>
    %cst_9 = arith.constant dense<0.000000e+00> : vector<8x128xf32>
    %11 = tpu.matmul %8, %10, %cst_9 {dimension_numbers = #tpu.dot_dimension_numbers<[1], [0], [0], [1], [0, 0, 1, 1], [], []>} : vector<8x128xf32>, vector<128x128xf32>, vector<8x128xf32> -> vector<8x128xf32>
    %c0_10 = arith.constant 0 : index
    %c0_11 = arith.constant 0 : index
    %c0_12 = arith.constant 0 : index
    %12 = vector.load %arg5[%c0_10, %c0_11, %c0_12] : memref<2x1x128xf32, #tpu.memory_space<vmem>>, vector<1x1x128xf32>
    %13 = vector.shape_cast %12 : vector<1x1x128xf32> to vector<1x128xf32>
    %14 = vector.broadcast %13 : vector<1x128xf32> to vector<8x128xf32>
    %15 = arith.addf %11, %14 : vector<8x128xf32>
    %cst_13 = arith.constant 0.00999999977 : f32
    %16 = vector.broadcast %cst_13 : f32 to vector<8x128xf32>
    %17 = arith.mulf %16, %15 : vector<8x128xf32>
    %18 = arith.maximumf %15, %17 : vector<8x128xf32>
    %c1 = arith.constant 1 : index
    %c0_14 = arith.constant 0 : index
    %c0_15 = arith.constant 0 : index
    %19 = vector.load %arg4[%c1, %c0_14, %c0_15] : memref<2x128x128xf32, #tpu.memory_space<vmem>>, vector<1x128x128xf32>
    %20 = vector.shape_cast %19 : vector<1x128x128xf32> to vector<128x128xf32>
    %cst_16 = arith.constant dense<0.000000e+00> : vector<8x128xf32>
    %21 = tpu.matmul %18, %20, %cst_16 {dimension_numbers = #tpu.dot_dimension_numbers<[1], [0], [0], [1], [0, 0, 1, 1], [], []>} : vector<8x128xf32>, vector<128x128xf32>, vector<8x128xf32> -> vector<8x128xf32>
    %c1_17 = arith.constant 1 : index
    %c0_18 = arith.constant 0 : index
    %c0_19 = arith.constant 0 : index
    %22 = vector.load %arg5[%c1_17, %c0_18, %c0_19] : memref<2x1x128xf32, #tpu.memory_space<vmem>>, vector<1x1x128xf32>
    %23 = vector.shape_cast %22 : vector<1x1x128xf32> to vector<1x128xf32>
    %24 = vector.broadcast %23 : vector<1x128xf32> to vector<8x128xf32>
    %25 = arith.addf %21, %24 : vector<8x128xf32>
    %26 = arith.addf %5, %25 : vector<8x128xf32>
    %cst_20 = arith.constant 0.00999999977 : f32
    %27 = vector.broadcast %cst_20 : f32 to vector<8x128xf32>
    %28 = arith.mulf %27, %26 : vector<8x128xf32>
    %29 = arith.maximumf %26, %28 : vector<8x128xf32>
    %c0_21 = arith.constant 0 : index
    %c0_22 = arith.constant 0 : index
    %30 = vector.load %arg6[%c0_21, %c0_22] : memref<128x128xf32, #tpu.memory_space<vmem>>, vector<128x128xf32>
    %cst_23 = arith.constant dense<0.000000e+00> : vector<8x128xf32>
    %31 = tpu.matmul %29, %30, %cst_23 {dimension_numbers = #tpu.dot_dimension_numbers<[1], [0], [0], [1], [0, 0, 1, 1], [], []>} : vector<8x128xf32>, vector<128x128xf32>, vector<8x128xf32> -> vector<8x128xf32>
    %c0_24 = arith.constant 0 : index
    %c0_25 = arith.constant 0 : index
    %32 = vector.load %arg7[%c0_24, %c0_25] : memref<1x128xf32, #tpu.memory_space<vmem>>, vector<1x128xf32>
    %33 = vector.broadcast %32 : vector<1x128xf32> to vector<8x128xf32>
    %34 = arith.addf %31, %33 : vector<8x128xf32>
    %c0_26 = arith.constant 0 : index
    %c0_27 = arith.constant 0 : index
    %35 = vector.load %arg8[%c0_26, %c0_27] : memref<8x128xf32, #tpu.memory_space<vmem>>, vector<8x128xf32>
    tpu.vector_store %arg8[%c0_26, %c0_27], %34 {strides = array<i32>} : memref<8x128xf32, #tpu.memory_space<vmem>>, vector<8x128xf32>,
    return
  }
  func.func @transform_0(%arg0: i32) -> (i32, i32) {
    %c0_i32 = arith.constant 0 : i32
    %c0_i32_0 = arith.constant 0 : i32
    return %arg0, %c0_i32 : i32, i32
  }
  func.func @transform_1(%arg0: i32) -> (i32, i32) {
    %c0_i32 = arith.constant 0 : i32
    %c0_i32_0 = arith.constant 0 : i32
    %c0_i32_1 = arith.constant 0 : i32
    return %c0_i32, %c0_i32_0 : i32, i32
  }
  func.func @transform_2(%arg0: i32) -> (i32, i32) {
    %c0_i32 = arith.constant 0 : i32
    %c0_i32_0 = arith.constant 0 : i32
    %c0_i32_1 = arith.constant 0 : i32
    return %c0_i32, %c0_i32_0 : i32, i32
  }
  func.func @transform_3(%arg0: i32) -> (i32, i32, i32) {
    %c0_i32 = arith.constant 0 : i32
    %c0_i32_0 = arith.constant 0 : i32
    %c0_i32_1 = arith.constant 0 : i32
    %c0_i32_2 = arith.constant 0 : i32
    return %c0_i32, %c0_i32_0, %c0_i32_1 : i32, i32, i32
  }
  func.func @transform_4(%arg0: i32) -> (i32, i32, i32) {
    %c0_i32 = arith.constant 0 : i32
    %c0_i32_0 = arith.constant 0 : i32
    %c0_i32_1 = arith.constant 0 : i32
    %c0_i32_2 = arith.constant 0 : i32
    return %c0_i32, %c0_i32_0, %c0_i32_1 : i32, i32, i32
  }
  func.func @transform_5(%arg0: i32) -> (i32, i32) {
    %c0_i32 = arith.constant 0 : i32
    %c0_i32_0 = arith.constant 0 : i32
    %c0_i32_1 = arith.constant 0 : i32
    return %c0_i32, %c0_i32_0 : i32, i32
  }
  func.func @transform_6(%arg0: i32) -> (i32, i32) {
    %c0_i32 = arith.constant 0 : i32
    %c0_i32_0 = arith.constant 0 : i32
    %c0_i32_1 = arith.constant 0 : i32
    return %c0_i32, %c0_i32_0 : i32, i32
  }
  func.func @transform_7(%arg0: i32) -> (i32, i32) {
    %c0_i32 = arith.constant 0 : i32
    %c0_i32_0 = arith.constant 0 : i32
    return %arg0, %c0_i32 : i32, i32
  }
}

</mosaic_0001>

<bundles_post_ra>
// kernel: _mlp_forward.1
= control target key start
LH: loop header
LB: loop body
LE: loop exit
PB: predicated region body
PF: predicated region fallthrough
CT: control target
= control target key end

     0   :  { %12 = vsyncpa [#allocation3], 0  ;;  %s1311_s0 = inlined_call_operand.vmem [shape: f32[16,8], index: 0, kind: input, shape index: {}]   ;;  %s1312_s1 = inlined_call_operand.vmem [shape: f32[8,128], index: 1, kind: input, shape index: {}]   ;;  %s1313_s2 = inlined_call_operand.vmem [shape: f32[1,128], index: 2, kind: input, shape index: {}]   ;;  %s1314_s3 = inlined_call_operand.hbm [shape: f32[2,128,128], index: 3, kind: input, shape index: {}]   ;;  %s1315_s4 = inlined_call_operand.vmem [shape: f32[2,1,128], index: 4, kind: input, shape index: {}]   ;;  %s1316_s5 = inlined_call_operand.hbm [shape: f32[128,128], index: 5, kind: input, shape index: {}]   ;;  %s1317_s6 = inlined_call_operand.vmem [shape: f32[1,128], index: 6, kind: input, shape index: {}]   ;;  %s1318_s7 = inlined_call_operand.vmem [shape: f32[16,128], index: 7, kind: output, shape index: {}]  }
   0x1   :  { %13 = vsyncpa [#allocation5], 0  ;;  %s1158_s24 = smov 0  }
   0x2 LB: > { %s1164_s25 = sadd.s32 4294967295, %s1109_s24   ;;  %p753_p0 = scmp.ge.s32.totalorder %s1109_s24, 1  ;;  %s1109_s24 = sphi %s1158_s24, %s19_s24  }
   0x3   : > { %p202_p1 = scmp.lt.s32.totalorder %s1109_s24, 3  ;;  %s1111_s26 = smov [#allocation2]  }
   0x4   : > { %s220_s27 = sshll.u32 %s1111_s26, 4  ;;  %p1319_p3 = scmp.eq.s32.totalorder %s1164_s25, 0  ;;  %s221_s27 = int_to_ptr.vmem [resolvable:$true] %s220_s27 }
   0x5   : > { %p1168_p2 = pnand %p753_p0, %p202_p1  ;;  %s1112_s29 = smov [#allocation4]  }
   0x6   : > { %s236_s30 = sshll.u32 %s1112_s29, 4  ;;  %s1039_s11 = scalar_lea.hbm %s1314_s3, 4096  ;;  %s1181_s30 = int_to_ptr.vmem [resolvable:$true] %s236_s30 }
   0x7   : > { %s1321_s28 = scalar_select %p1168_p2, 1, 0 }
   0x8   : > { %p1013_p4 = pneg %p1168_p2  ;;  %p1040_p6 = scmp.ne.s32.totalorder %s1314_s3, %s1039_s11 }
   0x9   : > { %p1046_p10 = scmp.lt.u32.totalorder %s1039_s11, %s1314_s3 }
   0xa   : > { %p1177_p5 = pnand %p1319_p3, %p1013_p4 }
   0xc   : > { %p1041_p7 = pneg %p1177_p5 }
   0xe   : > { %p1042_p8 = pnand %p1041_p7, %p1040_p6 }
  0x10   : > { %p1043_p9 = pneg %p1042_p8 }
  0x12   : > { %p1048_p11 = pnand %p1046_p10, %p1043_p9 }
  0x14   : > { %1051 = shalt.err (!%p1048_p11)
}
  0x15   : > { %s1052_s16 = scalar_lea.vmem %s221_s27, 4096  ;;  %p1060_p1 = scmp.lt.s32.totalorder %s221_s27, %s221_s27 }
  0x16   : > { %p1053_p12 = scmp.ne.s32.totalorder %s221_s27, %s1052_s16  ;;  %p1061_p4 = scmp.lt.s32.totalorder %s1052_s16, %s1052_s16 }
  0x18   : > { %p1055_p13 = pnand %p1053_p12, %p1041_p7  ;;  %p1062_p3 = por %p1061_p4, %p1060_p1 }
  0x1a   : > { %p1056_p0 = pneg %p1055_p13 }
  0x1c   : > { %p1063_p2 = pnand %p1062_p3, %p1056_p0 }
  0x1e   : > { %1066 = shalt.err (!%p1063_p2)
}
  0x1f   : > { %s1113_s17 = smov 128   ;;  %s1114_s18 = smov 8  }
  0x20   : > { %1016 = dma.hbm_to_vmem [thread:$0]  (!%p1177_p5), %s1314_s3, 4096, %s221_s27, [#allocation3], %s1113_s17, %s1113_s17, %s1114_s18  }
  0x21   : > { %s1067_s23 = scalar_lea.hbm %s1316_s5, 2048 }
  0x22   : > { %p1068_p6 = scmp.ne.s32.totalorder %s1316_s5, %s1067_s23  ;;  %p1074_p8 = scmp.lt.u32.totalorder %s1067_s23, %s1316_s5 }
  0x24   : > { %p1070_p2 = pnand %p1068_p6, %p1041_p7 }
  0x26   : > { %p1071_p3 = pneg %p1070_p2 }
  0x28   : > { %p1076_p9 = pnand %p1074_p8, %p1071_p3 }
  0x2a   : > { %1079 = shalt.err (!%p1076_p9)
}
  0x2b   : > { %s1080_s27 = scalar_lea.vmem %s1181_s30, 2048  ;;  %p1088_p13 = scmp.lt.s32.totalorder %s1181_s30, %s1181_s30 }
  0x2c   : > { %p1081_p10 = scmp.ne.s32.totalorder %s1181_s30, %s1080_s27  ;;  %p1089_p0 = scmp.lt.s32.totalorder %s1080_s27, %s1080_s27 }
  0x2e   : > { %p1083_p11 = pnand %p1081_p10, %p1041_p7  ;;  %p1090_p1 = por %p1089_p0, %p1088_p13 }
  0x30   : > { %p1084_p12 = pneg %p1083_p11 }
  0x32   : > { %p1091_p4 = pnand %p1090_p1, %p1084_p12 }
  0x34   : > { %1094 = shalt.err (!%p1091_p4)
}
  0x35   : > { %1019 = dma.hbm_to_vmem [thread:$0]  (!%p1177_p5), %s1316_s5, 2048, %s1181_s30, [#allocation5], %s1113_s17, %s1113_s17, %s1114_s18  }
  0x36   : > { %p1323_p6 = scmp.ne.s32.totalorder %s1321_s28, 0 }
  0x37   : > { %p1324_p2 = scmp.eq.s32.totalorder (!%p1323_p6), %s1164_s25, 0 }
  0x38   : > { %262 = sbr.rel (%p1323_p6) target bundleno = 944 (0x3b0), region = 48 }
  0x3f   : > { %1100 = dma.done.wait (%p1324_p2), [#allocation3], 4096   ;;  %p1325_p7 = pmov %p1324_p2 }
  0x40   : > { %p1326_p3 = pmov %p1324_p2 }
  0x41   : > { %1102 = vsyncadd (%p1325_p7), [#allocation3], 4294963200 }
  0x42   : > { %1104 = dma.done.wait (%p1326_p3), [#allocation5], 2048   ;;  %p1327_p8 = pmov %p1324_p2 }
  0x43   : > { %p296_p9 = scmp.lt.s32.totalorder %s1164_s25, 1  ;;  %v1115_v0 = vmov 0.0   ;;  %vm1116_vm0 = vmmov 0   ;;  %v1117_v1 = vmov 0.0|0.0   ;;  %vm313_vm1 = vcmask 64512   ;;  %v305_v2 = vld [vmem:[%s1312_s1] sm:$0xff] }
  0x44   : > { %1106 = vsyncadd (%p1327_p8), [#allocation5], 4294965248  ;;  %823 = vmatprep.subr.mxu0 %v1115_v0  ;;  %825 = vmatprep.mubr.msk.f32.mxu0 %vm1116_vm0, %v1115_v0  ;;  %v389_v4 = vld [vmem:[#allocation2] sm:$0xff]  ;;  %v390_v5 = vld [vmem:[#allocation2 + $0x8] sm:$0xff] }
  0x45   : > { %s1329_s25 = smov (!%p296_p9, %s1164_s25), 1  ;;  %933 = vmatprep.subr.bf16.mxu1 %v1117_v1  ;;  %860 = vmatprep.mubr.msk.f32.mxu1 %vm1116_vm0, %v1115_v0  ;;  %v391_v6 = vld [vmem:[#allocation2 + $0x10] sm:$0xff]  ;;  %v392_v7 = vld [vmem:[#allocation2 + $0x18] sm:$0xff]  ;;  %v934_v8 = vpack.c.bf16 %v390_v5, %v389_v4  ;;  %v393_v10 = vld [vmem:[#allocation2 + $0x20] sm:$0xff] }
  0x46   : > { %s760_s28 = sshll.u32 %s1329_s25, 3  ;;  %824 = vmatpush3.msra.mxu0 %v305_v2  ;;  %v937_v9 = vpack.c.bf16 %v392_v7, %v391_v6  ;;  %v394_v11 = vld [vmem:[#allocation2 + $0x28] sm:$0xff]  ;;  %v395_v13 = vld [vmem:[#allocation2 + $0x30] sm:$0xff]  ;;  %v396_v14 = vld [vmem:[#allocation2 + $0x38] sm:$0xff] }
  0x47   : > { %s299_s13 = scalar_lea.vmem %s1311_s0, %s760_s28  ;;  %957 = vmatprep.subr.bf16.mxu0 %v1117_v1  ;;  %935 = vmatpush3.bf16.msra.mxu1 %v934_v8  ;;  %v940_v12 = vpack.c.bf16 %v394_v11, %v393_v10  ;;  %v943_v15 = vpack.c.bf16 %v396_v14, %v395_v13  ;;  %v397_v16 = vld [vmem:[#allocation2 + $0x40] sm:$0xff]  ;;  %v398_v17 = vld [vmem:[#allocation2 + $0x48] sm:$0xff]  ;;  %v399_v19 = vld [vmem:[#allocation2 + $0x50] sm:$0xff]  ;;  %s303_s9 = scalar_lea.vmem %s1318_s7, %s760_s28 }
  0x48   : > { %v304_v3 = vld [vmem:[%s299_s13] sm:$0xff]  ;;  %936 = vmatprep.subr.bf16.mxu1 %v1117_v1  ;;  %v946_v18 = vpack.c.bf16 %v398_v17, %v397_v16  ;;  %v400_v20 = vld [vmem:[#allocation2 + $0x58] sm:$0xff]  ;;  %v402_v23 = vld [vmem:[#allocation2 + $0x68] sm:$0xff] }
  0x49   : > { %826 = vmatmul.mubr.msk.f32.vlgmr.msra.gmra.mrb[0].mxu0 %vm313_vm1, %v304_v3  ;;  %v949_v21 = vpack.c.bf16 %v400_v20, %v399_v19  ;;  %v401_v22 = vld [vmem:[#allocation2 + $0x60] sm:$0xff]  ;;  %v403_v25 = vld [vmem:[#allocation2 + $0x70] sm:$0xff]  ;;  %v404_v26 = vld [vmem:[#allocation2 + $0x78] sm:$0xff] }
  0x4a   : > { %895 = vmatprep.mubr.msk.f32.mxu0 %vm1116_vm0, %v1115_v0  ;;  %v952_v24 = vpack.c.bf16 %v402_v23, %v401_v22  ;;  %v955_v27 = vpack.c.bf16 %v404_v26, %v403_v25  ;;  %v485_v28 = vld [vmem:[#allocation2 + $0x80] sm:$0xff]  ;;  %v486_v29 = vld [vmem:[#allocation2 + $0x88] sm:$0xff]  ;;  %v487_v30 = vld [vmem:[#allocation2 + $0x90] sm:$0xff] }
  0x4b   : > { %938 = vmatpush3.bf16.msra.mxu1 %v937_v9  ;;  %v958_v31 = vpack.c.bf16 %v486_v29, %v485_v28  ;;  %v488_v32 = vld [vmem:[#allocation2 + $0x98] sm:$0xff]  ;;  %v489_v34 = vld [vmem:[#allocation2 + $0xa0] sm:$0xff]  ;;  %v490_v35 = vld [vmem:[#allocation2 + $0xa8] sm:$0xff] }
  0x4c   : > { %939 = vmatprep.subr.bf16.mxu1 %v1117_v1  ;;  %v961_v33 = vpack.c.bf16 %v488_v32, %v487_v30  ;;  %v964_v36 = vpack.c.bf16 %v490_v35, %v489_v34  ;;  %v491_v37 = vld [vmem:[#allocation2 + $0xb0] sm:$0xff]  ;;  %v492_v38 = vld [vmem:[#allocation2 + $0xb8] sm:$0xff]  ;;  %v493_v40 = vld [vmem:[#allocation2 + $0xc0] sm:$0xff] }
  0x4d   : > { %959 = vmatpush3.bf16.msra.mxu0 %v958_v31  ;;  %v967_v39 = vpack.c.bf16 %v492_v38, %v491_v37  ;;  %v494_v41 = vld [vmem:[#allocation2 + $0xc8] sm:$0xff]  ;;  %v495_v43 = vld [vmem:[#allocation2 + $0xd0] sm:$0xff]  ;;  %v496_v44 = vld [vmem:[#allocation2 + $0xd8] sm:$0xff] }
  0x4e   : > { %960 = vmatprep.subr.bf16.mxu0 %v1117_v1  ;;  %v970_v42 = vpack.c.bf16 %v494_v41, %v493_v40  ;;  %v973_v45 = vpack.c.bf16 %v496_v44, %v495_v43  ;;  %v762_v46 = vld [vmem:[%s1313_s2] ss:$0 sm:$0xff]  ;;  %v498_v53 = vld [vmem:[#allocation2 + $0xe8] sm:$0xff]  ;;  %v499_v55 = vld [vmem:[#allocation2 + $0xf0] sm:$0xff] }
  0x4f   : > { %941 = vmatpush3.bf16.msra.mxu1 %v940_v12  ;;  %v497_v52 = vld [vmem:[#allocation2 + $0xe0] sm:$0xff]  ;;  %v500_v56 = vld [vmem:[#allocation2 + $0xf8] sm:$0xff]  ;;  %v583_v59 = vld [vmem:[#allocation4 + $0x8] sm:$0xff] }
  0x50   : > { %942 = vmatprep.subr.bf16.mxu1 %v1117_v1  ;;  %v976_v54 = vpack.c.bf16 %v498_v53, %v497_v52  ;;  %v979_v57 = vpack.c.bf16 %v500_v56, %v499_v55  ;;  %v582_v58 = vld [vmem:[#allocation4] sm:$0xff]  ;;  %v584_v60 = vld [vmem:[#allocation4 + $0x10] sm:$0xff]  ;;  %v585_v62 = vld [vmem:[#allocation4 + $0x18] sm:$0xff] }
  0x51   : > { %962 = vmatpush3.bf16.msra.mxu0 %v961_v33  ;;  %v982_v61 = vpack.c.bf16 %v583_v59, %v582_v58  ;;  %v985_v63 = vpack.c.bf16 %v585_v62, %v584_v60  ;;  %v587_v2 = vld [vmem:[#allocation4 + $0x28] sm:$0xff]  ;;  %v588_v4 = vld [vmem:[#allocation4 + $0x30] sm:$0xff]  ;;  %v589_v5 = vld [vmem:[#allocation4 + $0x38] sm:$0xff] }
  0x52   : > { %963 = vmatprep.subr.bf16.mxu0 %v1117_v1  ;;  %v991_v6 = vpack.c.bf16 %v589_v5, %v588_v4  ;;  %v590_v7 = vld [vmem:[#allocation4 + $0x40] sm:$0xff]  ;;  %v591_v8 = vld [vmem:[#allocation4 + $0x48] sm:$0xff]  ;;  %v592_v10 = vld [vmem:[#allocation4 + $0x50] sm:$0xff] }
  0x53   : > { %944 = vmatpush3.bf16.msra.mxu1 %v943_v15  ;;  %v994_v9 = vpack.c.bf16 %v591_v8, %v590_v7  ;;  %v593_v11 = vld [vmem:[#allocation4 + $0x58] sm:$0xff]  ;;  %v764_v13 = vld [vmem:[%s1315_s4] ss:$0 sm:$0xff]  ;;  %v595_v20 = vld [vmem:[#allocation4 + $0x68] sm:$0xff] }
  0x54   : > { %945 = vmatprep.subr.bf16.mxu1 %v1117_v1  ;;  %v997_v12 = vpack.c.bf16 %v593_v11, %v592_v10  ;;  %v594_v19 = vld [vmem:[#allocation4 + $0x60] sm:$0xff]  ;;  %v596_v22 = vld [vmem:[#allocation4 + $0x70] sm:$0xff]  ;;  %v597_v23 = vld [vmem:[#allocation4 + $0x78] sm:$0xff] }
  0x55   : > { %965 = vmatpush3.bf16.msra.mxu0 %v964_v36  ;;  %v766_v25 = vld [vmem:[%s1315_s4 + $0x1] ss:$0 sm:$0xff] }
  0x56   : > { %966 = vmatprep.subr.bf16.mxu0 %v1117_v1 }
  0x57   : > { %947 = vmatpush3.bf16.msra.mxu1 %v946_v18 }
  0x58   : > { %948 = vmatprep.subr.bf16.mxu1 %v1117_v1 }
  0x59   : > { %968 = vmatpush3.bf16.msra.mxu0 %v967_v39 }
  0x5a   : > { %969 = vmatprep.subr.bf16.mxu0 %v1117_v1 }
  0x5b   : > { %950 = vmatpush3.bf16.msra.mxu1 %v949_v21  ;;  %v1000_v21 = vpack.c.bf16 %v595_v20, %v594_v19 }
  0x5c   : > { %951 = vmatprep.subr.bf16.mxu1 %v1117_v1 }
  0x5d   : > { %971 = vmatpush3.bf16.msra.mxu0 %v970_v42 }
  0x5e   : > { %972 = vmatprep.subr.bf16.mxu0 %v1117_v1 }
  0x5f   : > { %953 = vmatpush3.bf16.msra.mxu1 %v952_v24  ;;  %v1003_v24 = vpack.c.bf16 %v597_v23, %v596_v22 }
  0x60   : > { %954 = vmatprep.subr.bf16.mxu1 %v1117_v1 }
  0x61   : > { %974 = vmatpush3.bf16.msra.mxu0 %v973_v45 }
  0x62   : > { %975 = vmatprep.subr.bf16.mxu0 %v1117_v1 }
  0x63   : > { %956 = vmatpush3.bf16.msra.mxu1 %v955_v27 }
  0x64   : > { %981 = vmatprep.subr.bf16.mxu1 %v1117_v1 }
  0x65   : > { %977 = vmatpush3.bf16.msra.mxu0 %v976_v54 }
  0x66   : > { %978 = vmatprep.subr.bf16.mxu0 %v1117_v1 }
  0x69   : > { %980 = vmatpush3.bf16.msra.mxu0 %v979_v57 }
 0x11c   : > { %v383_v47 = vpop.f32.mrb[0].mxu0 }
 0x11d   : > { %v1279_v48 = vadd.f32 %v762_v46, %v383_v47  ;;  %v827_v49 = vpop.f32.mrb[1].mxu0 }
 0x11f   : > { %v387_v50 = vmul.f32 0.01, %v1279_v48 }
 0x121   : > { %v388_v51 = vmax.f32 %v1279_v48, %v387_v50 }
 0x123   : > { %861 = vmatmul.mubr.f32.vlgmr.msra.gmra.mrb[0].mxu1 %v388_v51 }
 0x124   : > { %930 = vmatprep.mubr.msk.f32.mxu1 %vm1116_vm0, %v1115_v0  ;;  %983 = vmatpush3.bf16.msra.mxu1 %v982_v61  ;;  %v586_v0 = vld [vmem:[#allocation4 + $0x20] sm:$0xff] }
 0x125   : > { %984 = vmatprep.subr.bf16.mxu1 %v1117_v1  ;;  %v988_v3 = vpack.c.bf16 %v587_v2, %v586_v0 }
 0x128   : > { %986 = vmatpush3.bf16.msra.mxu1 %v985_v63 }
 0x129   : > { %987 = vmatprep.subr.bf16.mxu1 %v1117_v1 }
 0x12c   : > { %989 = vmatpush3.bf16.msra.mxu1 %v988_v3 }
 0x12d   : > { %990 = vmatprep.subr.bf16.mxu1 %v1117_v1 }
 0x130   : > { %992 = vmatpush3.bf16.msra.mxu1 %v991_v6 }
 0x131   : > { %993 = vmatprep.subr.bf16.mxu1 %v1117_v1 }
 0x134   : > { %995 = vmatpush3.bf16.msra.mxu1 %v994_v9 }
 0x135   : > { %996 = vmatprep.subr.bf16.mxu1 %v1117_v1 }
 0x138   : > { %998 = vmatpush3.bf16.msra.mxu1 %v997_v12 }
 0x139   : > { %999 = vmatprep.subr.bf16.mxu1 %v1117_v1 }
 0x13c   : > { %1001 = vmatpush3.bf16.msra.mxu1 %v1000_v21 }
 0x13d   : > { %1002 = vmatprep.subr.bf16.mxu1 %v1117_v1  ;;  %v767_v1 = vld [vmem:[%s1317_s6] ss:$0 sm:$0xff] }
 0x140   : > { %1004 = vmatpush3.bf16.msra.mxu1 %v1003_v24 }
 0x1f6   : > { %v478_v14 = vpop.f32.mrb[0].mxu1 }
 0x1f7   : > { %v479_v15 = vadd.f32 %v764_v13, %v478_v14  ;;  %v862_v16 = vpop.f32.mrb[1].mxu1 }
 0x1f9   : > { %v482_v17 = vmul.f32 0.01, %v479_v15 }
 0x1fb   : > { %v483_v18 = vmax.f32 %v479_v15, %v482_v17 }
 0x1fd   : > { %896 = vmatmul.mubr.f32.vlgmr.msra.gmra.mrb[2].mxu0 %v483_v18 }
 0x2d0   : > { %v575_v26 = vpop.f32.mrb[2].mxu0 }
 0x2d1   : > { %v576_v27 = vadd.f32 %v766_v25, %v575_v26  ;;  %v897_v28 = vpop.f32.mrb[3].mxu0 }
 0x2d3   : > { %v579_v29 = vadd.f32 %v576_v27, %v1279_v48 }
 0x2d5   : > { %v580_v30 = vmul.f32 0.01, %v579_v29 }
 0x2d7   : > { %v581_v31 = vmax.f32 %v579_v29, %v580_v30 }
 0x2d9   : > { %931 = vmatmul.mubr.f32.vlgmr.msra.gmra.mrb[2].mxu1 %v581_v31 }
 0x3ac   : > { %v671_v32 = vpop.f32.mrb[2].mxu1 }
 0x3ad   : > { %v672_v33 = vadd.f32 %v767_v1, %v671_v32  ;;  %v932_v34 = vpop.f32.mrb[3].mxu1 }
 0x3af   : > { %675 = vst [vmem:[%s303_s9] sm:$0xff] %v672_v33 }
 0x3b0 PF: > { %s19_s24 = sadd.s32 1, %s1109_s24  }
 0x3b1   : > { %p16_p5 = scmp.ge.s32.totalorder %s19_s24, 4  }
 0x3b3   :  { %18 = sbr.rel (!%p16_p5) target bundleno = 2 (0x2), region = 89 }
 0x3ba   :  { %695 = vsyncpa [#allocation3], 1 }
 0x3bb   :  { %697 = vsyncpa [#allocation3 + $0x1], 1 }
 0x3bc   :  { %698 = vsyncpa [#allocation5], 1 }

// kernel: _mlp_forward.1
= control target key start
LH: loop header
LB: loop body
LE: loop exit
PB: predicated region body
PF: predicated region fallthrough
CT: control target
= control target key end

     0   :  { %12 = vsyncpa [#allocation3], 0  ;;  %s1311_s0 = inlined_call_operand.vmem [shape: f32[16,8], index: 0, kind: input, shape index: {}]   ;;  %s1312_s1 = inlined_call_operand.vmem [shape: f32[8,128], index: 1, kind: input, shape index: {}]   ;;  %s1313_s2 = inlined_call_operand.vmem [shape: f32[1,128], index: 2, kind: input, shape index: {}]   ;;  %s1314_s3 = inlined_call_operand.hbm [shape: f32[2,128,128], index: 3, kind: input, shape index: {}]   ;;  %s1315_s4 = inlined_call_operand.vmem [shape: f32[2,1,128], index: 4, kind: input, shape index: {}]   ;;  %s1316_s5 = inlined_call_operand.hbm [shape: f32[128,128], index: 5, kind: input, shape index: {}]   ;;  %s1317_s6 = inlined_call_operand.vmem [shape: f32[1,128], index: 6, kind: input, shape index: {}]   ;;  %s1318_s7 = inlined_call_operand.vmem [shape: f32[16,128], index: 7, kind: output, shape index: {}]  }
   0x1   :  { %13 = vsyncpa [#allocation5], 0  ;;  %s1158_s24 = smov 0  }
   0x2 LB: > { %s1164_s25 = sadd.s32 4294967295, %s1109_s24   ;;  %p753_p0 = scmp.ge.s32.totalorder %s1109_s24, 1  ;;  %s1109_s24 = sphi %s1158_s24, %s19_s24  }
   0x3   : > { %p202_p1 = scmp.lt.s32.totalorder %s1109_s24, 3  ;;  %s1111_s26 = smov [#allocation2]  }
   0x4   : > { %s220_s27 = sshll.u32 %s1111_s26, 4  ;;  %p1319_p3 = scmp.eq.s32.totalorder %s1164_s25, 0  ;;  %s221_s27 = int_to_ptr.vmem [resolvable:$true] %s220_s27 }
   0x5   : > { %p1168_p2 = pnand %p753_p0, %p202_p1  ;;  %s1112_s29 = smov [#allocation4]  }
   0x6   : > { %s236_s30 = sshll.u32 %s1112_s29, 4  ;;  %s1039_s11 = scalar_lea.hbm %s1314_s3, 4096  ;;  %s1181_s30 = int_to_ptr.vmem [resolvable:$true] %s236_s30 }
   0x7   : > { %s1321_s28 = scalar_select %p1168_p2, 1, 0 }
   0x8   : > { %p1013_p4 = pneg %p1168_p2  ;;  %p1040_p6 = scmp.ne.s32.totalorder %s1314_s3, %s1039_s11 }
   0x9   : > { %p1046_p10 = scmp.lt.u32.totalorder %s1039_s11, %s1314_s3 }
   0xa   : > { %p1177_p5 = pnand %p1319_p3, %p1013_p4 }
   0xc   : > { %p1041_p7 = pneg %p1177_p5 }
   0xe   : > { %p1042_p8 = pnand %p1041_p7, %p1040_p6 }
  0x10   : > { %p1043_p9 = pneg %p1042_p8 }
  0x12   : > { %p1048_p11 = pnand %p1046_p10, %p1043_p9 }
  0x14   : > { %1051 = shalt.err (!%p1048_p11)
}
  0x15   : > { %s1052_s16 = scalar_lea.vmem %s221_s27, 4096  ;;  %p1060_p1 = scmp.lt.s32.totalorder %s221_s27, %s221_s27 }
  0x16   : > { %p1053_p12 = scmp.ne.s32.totalorder %s221_s27, %s1052_s16  ;;  %p1061_p4 = scmp.lt.s32.totalorder %s1052_s16, %s1052_s16 }
  0x18   : > { %p1055_p13 = pnand %p1053_p12, %p1041_p7  ;;  %p1062_p3 = por %p1061_p4, %p1060_p1 }
  0x1a   : > { %p1056_p0 = pneg %p1055_p13 }
  0x1c   : > { %p1063_p2 = pnand %p1062_p3, %p1056_p0 }
  0x1e   : > { %1066 = shalt.err (!%p1063_p2)
}
  0x1f   : > { %s1113_s17 = smov 128   ;;  %s1114_s18 = smov 8  }
  0x20   : > { %1016 = dma.hbm_to_vmem [thread:$0]  (!%p1177_p5), %s1314_s3, 4096, %s221_s27, [#allocation3], %s1113_s17, %s1113_s17, %s1114_s18  }
  0x21   : > { %s1067_s23 = scalar_lea.hbm %s1316_s5, 2048 }
  0x22   : > { %p1068_p6 = scmp.ne.s32.totalorder %s1316_s5, %s1067_s23  ;;  %p1074_p8 = scmp.lt.u32.totalorder %s1067_s23, %s1316_s5 }
  0x24   : > { %p1070_p2 = pnand %p1068_p6, %p1041_p7 }
  0x26   : > { %p1071_p3 = pneg %p1070_p2 }
  0x28   : > { %p1076_p9 = pnand %p1074_p8, %p1071_p3 }
  0x2a   : > { %1079 = shalt.err (!%p1076_p9)
}
  0x2b   : > { %s1080_s27 = scalar_lea.vmem %s1181_s30, 2048  ;;  %p1088_p13 = scmp.lt.s32.totalorder %s1181_s30, %s1181_s30 }
  0x2c   : > { %p1081_p10 = scmp.ne.s32.totalorder %s1181_s30, %s1080_s27  ;;  %p1089_p0 = scmp.lt.s32.totalorder %s1080_s27, %s1080_s27 }
  0x2e   : > { %p1083_p11 = pnand %p1081_p10, %p1041_p7  ;;  %p1090_p1 = por %p1089_p0, %p1088_p13 }
  0x30   : > { %p1084_p12 = pneg %p1083_p11 }
  0x32   : > { %p1091_p4 = pnand %p1090_p1, %p1084_p12 }
  0x34   : > { %1094 = shalt.err (!%p1091_p4)
}
  0x35   : > { %1019 = dma.hbm_to_vmem [thread:$0]  (!%p1177_p5), %s1316_s5, 2048, %s1181_s30, [#allocation5], %s1113_s17, %s1113_s17, %s1114_s18  }
  0x36   : > { %p1323_p6 = scmp.ne.s32.totalorder %s1321_s28, 0 }
  0x37   : > { %p1324_p2 = scmp.eq.s32.totalorder (!%p1323_p6), %s1164_s25, 0 }
  0x38   : > { %262 = sbr.rel (%p1323_p6) target bundleno = 944 (0x3b0), region = 48 }
  0x3f   : > { %1100 = dma.done.wait (%p1324_p2), [#allocation3], 4096   ;;  %p1325_p7 = pmov %p1324_p2 }
  0x40   : > { %p1326_p3 = pmov %p1324_p2 }
  0x41   : > { %1102 = vsyncadd (%p1325_p7), [#allocation3], 4294963200 }
  0x42   : > { %1104 = dma.done.wait (%p1326_p3), [#allocation5], 2048   ;;  %p1327_p8 = pmov %p1324_p2 }
  0x43   : > { %p296_p9 = scmp.lt.s32.totalorder %s1164_s25, 1  ;;  %v1115_v0 = vmov 0.0   ;;  %vm1116_vm0 = vmmov 0   ;;  %v1117_v1 = vmov 0.0|0.0   ;;  %vm313_vm1 = vcmask 64512   ;;  %v305_v2 = vld [vmem:[%s1312_s1] sm:$0xff] }
  0x44   : > { %1106 = vsyncadd (%p1327_p8), [#allocation5], 4294965248  ;;  %823 = vmatprep.subr.mxu0 %v1115_v0  ;;  %825 = vmatprep.mubr.msk.f32.mxu0 %vm1116_vm0, %v1115_v0  ;;  %v389_v4 = vld [vmem:[#allocation2] sm:$0xff]  ;;  %v390_v5 = vld [vmem:[#allocation2 + $0x8] sm:$0xff] }
  0x45   : > { %s1329_s25 = smov (!%p296_p9, %s1164_s25), 1  ;;  %933 = vmatprep.subr.bf16.mxu1 %v1117_v1  ;;  %860 = vmatprep.mubr.msk.f32.mxu1 %vm1116_vm0, %v1115_v0  ;;  %v391_v6 = vld [vmem:[#allocation2 + $0x10] sm:$0xff]  ;;  %v392_v7 = vld [vmem:[#allocation2 + $0x18] sm:$0xff]  ;;  %v934_v8 = vpack.c.bf16 %v390_v5, %v389_v4  ;;  %v393_v10 = vld [vmem:[#allocation2 + $0x20] sm:$0xff] }
  0x46   : > { %s760_s28 = sshll.u32 %s1329_s25, 3  ;;  %824 = vmatpush3.msra.mxu0 %v305_v2  ;;  %v937_v9 = vpack.c.bf16 %v392_v7, %v391_v6  ;;  %v394_v11 = vld [vmem:[#allocation2 + $0x28] sm:$0xff]  ;;  %v395_v13 = vld [vmem:[#allocation2 + $0x30] sm:$0xff]  ;;  %v396_v14 = vld [vmem:[#allocation2 + $0x38] sm:$0xff] }
  0x47   : > { %s299_s13 = scalar_lea.vmem %s1311_s0, %s760_s28  ;;  %957 = vmatprep.subr.bf16.mxu0 %v1117_v1  ;;  %935 = vmatpush3.bf16.msra.mxu1 %v934_v8  ;;  %v940_v12 = vpack.c.bf16 %v394_v11, %v393_v10  ;;  %v943_v15 = vpack.c.bf16 %v396_v14, %v395_v13  ;;  %v397_v16 = vld [vmem:[#allocation2 + $0x40] sm:$0xff]  ;;  %v398_v17 = vld [vmem:[#allocation2 + $0x48] sm:$0xff]  ;;  %v399_v19 = vld [vmem:[#allocation2 + $0x50] sm:$0xff]  ;;  %s303_s9 = scalar_lea.vmem %s1318_s7, %s760_s28 }
  0x48   : > { %v304_v3 = vld [vmem:[%s299_s13] sm:$0xff]  ;;  %936 = vmatprep.subr.bf16.mxu1 %v1117_v1  ;;  %v946_v18 = vpack.c.bf16 %v398_v17, %v397_v16  ;;  %v400_v20 = vld [vmem:[#allocation2 + $0x58] sm:$0xff]  ;;  %v402_v23 = vld [vmem:[#allocation2 + $0x68] sm:$0xff] }
  0x49   : > { %826 = vmatmul.mubr.msk.f32.vlgmr.msra.gmra.mrb[0].mxu0 %vm313_vm1, %v304_v3  ;;  %v949_v21 = vpack.c.bf16 %v400_v20, %v399_v19  ;;  %v401_v22 = vld [vmem:[#allocation2 + $0x60] sm:$0xff]  ;;  %v403_v25 = vld [vmem:[#allocation2 + $0x70] sm:$0xff]  ;;  %v404_v26 = vld [vmem:[#allocation2 + $0x78] sm:$0xff] }
  0x4a   : > { %895 = vmatprep.mubr.msk.f32.mxu0 %vm1116_vm0, %v1115_v0  ;;  %v952_v24 = vpack.c.bf16 %v402_v23, %v401_v22  ;;  %v955_v27 = vpack.c.bf16 %v404_v26, %v403_v25  ;;  %v485_v28 = vld [vmem:[#allocation2 + $0x80] sm:$0xff]  ;;  %v486_v29 = vld [vmem:[#allocation2 + $0x88] sm:$0xff]  ;;  %v487_v30 = vld [vmem:[#allocation2 + $0x90] sm:$0xff] }
  0x4b   : > { %938 = vmatpush3.bf16.msra.mxu1 %v937_v9  ;;  %v958_v31 = vpack.c.bf16 %v486_v29, %v485_v28  ;;  %v488_v32 = vld [vmem:[#allocation2 + $0x98] sm:$0xff]  ;;  %v489_v34 = vld [vmem:[#allocation2 + $0xa0] sm:$0xff]  ;;  %v490_v35 = vld [vmem:[#allocation2 + $0xa8] sm:$0xff] }
  0x4c   : > { %939 = vmatprep.subr.bf16.mxu1 %v1117_v1  ;;  %v961_v33 = vpack.c.bf16 %v488_v32, %v487_v30  ;;  %v964_v36 = vpack.c.bf16 %v490_v35, %v489_v34  ;;  %v491_v37 = vld [vmem:[#allocation2 + $0xb0] sm:$0xff]  ;;  %v492_v38 = vld [vmem:[#allocation2 + $0xb8] sm:$0xff]  ;;  %v493_v40 = vld [vmem:[#allocation2 + $0xc0] sm:$0xff] }
  0x4d   : > { %959 = vmatpush3.bf16.msra.mxu0 %v958_v31  ;;  %v967_v39 = vpack.c.bf16 %v492_v38, %v491_v37  ;;  %v494_v41 = vld [vmem:[#allocation2 + $0xc8] sm:$0xff]  ;;  %v495_v43 = vld [vmem:[#allocation2 + $0xd0] sm:$0xff]  ;;  %v496_v44 = vld [vmem:[#allocation2 + $0xd8] sm:$0xff] }
  0x4e   : > { %960 = vmatprep.subr.bf16.mxu0 %v1117_v1  ;;  %v970_v42 = vpack.c.bf16 %v494_v41, %v493_v40  ;;  %v973_v45 = vpack.c.bf16 %v496_v44, %v495_v43  ;;  %v762_v46 = vld [vmem:[%s1313_s2] ss:$0 sm:$0xff]  ;;  %v498_v53 = vld [vmem:[#allocation2 + $0xe8] sm:$0xff]  ;;  %v499_v55 = vld [vmem:[#allocation2 + $0xf0] sm:$0xff] }
  0x4f   : > { %941 = vmatpush3.bf16.msra.mxu1 %v940_v12  ;;  %v497_v52 = vld [vmem:[#allocation2 + $0xe0] sm:$0xff]  ;;  %v500_v56 = vld [vmem:[#allocation2 + $0xf8] sm:$0xff]  ;;  %v583_v59 = vld [vmem:[#allocation4 + $0x8] sm:$0xff] }
  0x50   : > { %942 = vmatprep.subr.bf16.mxu1 %v1117_v1  ;;  %v976_v54 = vpack.c.bf16 %v498_v53, %v497_v52  ;;  %v979_v57 = vpack.c.bf16 %v500_v56, %v499_v55  ;;  %v582_v58 = vld [vmem:[#allocation4] sm:$0xff]  ;;  %v584_v60 = vld [vmem:[#allocation4 + $0x10] sm:$0xff]  ;;  %v585_v62 = vld [vmem:[#allocation4 + $0x18] sm:$0xff] }
  0x51   : > { %962 = vmatpush3.bf16.msra.mxu0 %v961_v33  ;;  %v982_v61 = vpack.c.bf16 %v583_v59, %v582_v58  ;;  %v985_v63 = vpack.c.bf16 %v585_v62, %v584_v60  ;;  %v587_v2 = vld [vmem:[#allocation4 + $0x28] sm:$0xff]  ;;  %v588_v4 = vld [vmem:[#allocation4 + $0x30] sm:$0xff]  ;;  %v589_v5 = vld [vmem:[#allocation4 + $0x38] sm:$0xff] }
  0x52   : > { %963 = vmatprep.subr.bf16.mxu0 %v1117_v1  ;;  %v991_v6 = vpack.c.bf16 %v589_v5, %v588_v4  ;;  %v590_v7 = vld [vmem:[#allocation4 + $0x40] sm:$0xff]  ;;  %v591_v8 = vld [vmem:[#allocation4 + $0x48] sm:$0xff]  ;;  %v592_v10 = vld [vmem:[#allocation4 + $0x50] sm:$0xff] }
  0x53   : > { %944 = vmatpush3.bf16.msra.mxu1 %v943_v15  ;;  %v994_v9 = vpack.c.bf16 %v591_v8, %v590_v7  ;;  %v593_v11 = vld [vmem:[#allocation4 + $0x58] sm:$0xff]  ;;  %v764_v13 = vld [vmem:[%s1315_s4] ss:$0 sm:$0xff]  ;;  %v595_v20 = vld [vmem:[#allocation4 + $0x68] sm:$0xff] }
  0x54   : > { %945 = vmatprep.subr.bf16.mxu1 %v1117_v1  ;;  %v997_v12 = vpack.c.bf16 %v593_v11, %v592_v10  ;;  %v594_v19 = vld [vmem:[#allocation4 + $0x60] sm:$0xff]  ;;  %v596_v22 = vld [vmem:[#allocation4 + $0x70] sm:$0xff]  ;;  %v597_v23 = vld [vmem:[#allocation4 + $0x78] sm:$0xff] }
  0x55   : > { %965 = vmatpush3.bf16.msra.mxu0 %v964_v36  ;;  %v766_v25 = vld [vmem:[%s1315_s4 + $0x1] ss:$0 sm:$0xff] }
  0x56   : > { %966 = vmatprep.subr.bf16.mxu0 %v1117_v1 }
  0x57   : > { %947 = vmatpush3.bf16.msra.mxu1 %v946_v18 }
  0x58   : > { %948 = vmatprep.subr.bf16.mxu1 %v1117_v1 }
  0x59   : > { %968 = vmatpush3.bf16.msra.mxu0 %v967_v39 }
  0x5a   : > { %969 = vmatprep.subr.bf16.mxu0 %v1117_v1 }
  0x5b   : > { %950 = vmatpush3.bf16.msra.mxu1 %v949_v21  ;;  %v1000_v21 = vpack.c.bf16 %v595_v20, %v594_v19 }
  0x5c   : > { %951 = vmatprep.subr.bf16.mxu1 %v1117_v1 }
  0x5d   : > { %971 = vmatpush3.bf16.msra.mxu0 %v970_v42 }
  0x5e   : > { %972 = vmatprep.subr.bf16.mxu0 %v1117_v1 }
  0x5f   : > { %953 = vmatpush3.bf16.msra.mxu1 %v952_v24  ;;  %v1003_v24 = vpack.c.bf16 %v597_v23, %v596_v22 }
  0x60   : > { %954 = vmatprep.subr.bf16.mxu1 %v1117_v1 }
  0x61   : > { %974 = vmatpush3.bf16.msra.mxu0 %v973_v45 }
  0x62   : > { %975 = vmatprep.subr.bf16.mxu0 %v1117_v1 }
  0x63   : > { %956 = vmatpush3.bf16.msra.mxu1 %v955_v27 }
  0x64   : > { %981 = vmatprep.subr.bf16.mxu1 %v1117_v1 }
  0x65   : > { %977 = vmatpush3.bf16.msra.mxu0 %v976_v54 }
  0x66   : > { %978 = vmatprep.subr.bf16.mxu0 %v1117_v1 }
  0x69   : > { %980 = vmatpush3.bf16.msra.mxu0 %v979_v57 }
 0x11c   : > { %v383_v47 = vpop.f32.mrb[0].mxu0 }
 0x11d   : > { %v1279_v48 = vadd.f32 %v762_v46, %v383_v47  ;;  %v827_v49 = vpop.f32.mrb[1].mxu0 }
 0x11f   : > { %v387_v50 = vmul.f32 0.01, %v1279_v48 }
 0x121   : > { %v388_v51 = vmax.f32 %v1279_v48, %v387_v50 }
 0x123   : > { %861 = vmatmul.mubr.f32.vlgmr.msra.gmra.mrb[0].mxu1 %v388_v51 }
 0x124   : > { %930 = vmatprep.mubr.msk.f32.mxu1 %vm1116_vm0, %v1115_v0  ;;  %983 = vmatpush3.bf16.msra.mxu1 %v982_v61  ;;  %v586_v0 = vld [vmem:[#allocation4 + $0x20] sm:$0xff] }
 0x125   : > { %984 = vmatprep.subr.bf16.mxu1 %v1117_v1  ;;  %v988_v3 = vpack.c.bf16 %v587_v2, %v586_v0 }
 0x128   : > { %986 = vmatpush3.bf16.msra.mxu1 %v985_v63 }
 0x129   : > { %987 = vmatprep.subr.bf16.mxu1 %v1117_v1 }
 0x12c   : > { %989 = vmatpush3.bf16.msra.mxu1 %v988_v3 }
 0x12d   : > { %990 = vmatprep.subr.bf16.mxu1 %v1117_v1 }
 0x130   : > { %992 = vmatpush3.bf16.msra.mxu1 %v991_v6 }
 0x131   : > { %993 = vmatprep.subr.bf16.mxu1 %v1117_v1 }
 0x134   : > { %995 = vmatpush3.bf16.msra.mxu1 %v994_v9 }
 0x135   : > { %996 = vmatprep.subr.bf16.mxu1 %v1117_v1 }
 0x138   : > { %998 = vmatpush3.bf16.msra.mxu1 %v997_v12 }
 0x139   : > { %999 = vmatprep.subr.bf16.mxu1 %v1117_v1 }
 0x13c   : > { %1001 = vmatpush3.bf16.msra.mxu1 %v1000_v21 }
 0x13d   : > { %1002 = vmatprep.subr.bf16.mxu1 %v1117_v1  ;;  %v767_v1 = vld [vmem:[%s1317_s6] ss:$0 sm:$0xff] }
 0x140   : > { %1004 = vmatpush3.bf16.msra.mxu1 %v1003_v24 }
 0x1f6   : > { %v478_v14 = vpop.f32.mrb[0].mxu1 }
 0x1f7   : > { %v479_v15 = vadd.f32 %v764_v13, %v478_v14  ;;  %v862_v16 = vpop.f32.mrb[1].mxu1 }
 0x1f9   : > { %v482_v17 = vmul.f32 0.01, %v479_v15 }
 0x1fb   : > { %v483_v18 = vmax.f32 %v479_v15, %v482_v17 }
 0x1fd   : > { %896 = vmatmul.mubr.f32.vlgmr.msra.gmra.mrb[2].mxu0 %v483_v18 }
 0x2d0   : > { %v575_v26 = vpop.f32.mrb[2].mxu0 }
 0x2d1   : > { %v576_v27 = vadd.f32 %v766_v25, %v575_v26  ;;  %v897_v28 = vpop.f32.mrb[3].mxu0 }
 0x2d3   : > { %v579_v29 = vadd.f32 %v576_v27, %v1279_v48 }
 0x2d5   : > { %v580_v30 = vmul.f32 0.01, %v579_v29 }
 0x2d7   : > { %v581_v31 = vmax.f32 %v579_v29, %v580_v30 }
 0x2d9   : > { %931 = vmatmul.mubr.f32.vlgmr.msra.gmra.mrb[2].mxu1 %v581_v31 }
 0x3ac   : > { %v671_v32 = vpop.f32.mrb[2].mxu1 }
 0x3ad   : > { %v672_v33 = vadd.f32 %v767_v1, %v671_v32  ;;  %v932_v34 = vpop.f32.mrb[3].mxu1 }
 0x3af   : > { %675 = vst [vmem:[%s303_s9] sm:$0xff] %v672_v33 }
 0x3b0 PF: > { %s19_s24 = sadd.s32 1, %s1109_s24  }
 0x3b1   : > { %p16_p5 = scmp.ge.s32.totalorder %s19_s24, 4  }
 0x3b3   :  { %18 = sbr.rel (!%p16_p5) target bundleno = 2 (0x2), region = 89 }
 0x3ba   :  { %695 = vsyncpa [#allocation3], 1 }
 0x3bb   :  { %697 = vsyncpa [#allocation3 + $0x1], 1 }
 0x3bc   :  { %698 = vsyncpa [#allocation5], 1 }

</bundles_post_ra>
